<compile_context>
chip_gen: v5e
topology: v5e:2x2
jax: 0.10.0
libtpu: 0.0.40
codegen_flags: <defaults>
</compile_context>

<pallas_src>
import functools

import jax
import jax.numpy as jnp
from jax.experimental import pallas as pl
from jax.experimental.pallas import tpu as pltpu


# ---------------------------------------------------------------------------
# Fused Pallas kernel: the whole GCN layer stack for TILE_TB (t, b) slabs.
# Grid iterates over tiles of the flattened (T*B) batch dimension.
# ---------------------------------------------------------------------------
def _sge_fused_kernel(adj_ref, x_ref, w1_ref, b1_ref, w2_ref, b2_ref,
                      o_ref, h_ref, *, tile_tb, num_nodes, order, d_in,
                      agg_cat):
    """
    adj_ref : (N, N)                bf16 (shared, constant index_map)
    x_ref   : (tile_tb * N, Din)    f32  node features for this tile
    w1_ref  : (n_blocks, Din, H)    bf16 stacked (unique) layer-1 weights
    b1_ref  : (n_blocks, 1, H)      f32
    w2_ref  : (n_blocks, H, Dout)   bf16 stacked (unique) layer-2 weights
    b2_ref  : (n_blocks, 1, Dout)   f32
    o_ref   : (tile_tb * N, Dtot)   f32  output ([x | feats] if cat else x+feats)
    h_ref   : (tile_tb * N, Dout)   f32  VMEM scratch (activations stay resident)
    order   : static tuple of block indices to apply, e.g. (0, 0, 1, 2)
    """
    f32 = jnp.float32
    bf16 = jnp.bfloat16

    adj = adj_ref[...]                     # (N, N) bf16
    x0 = x_ref[...]                        # (R, Din) f32
    acts = x0

    # Statically unrolled over the (small, fixed) application order; repeated
    # block indices reuse the same VMEM-resident weight tile.
    for l in order:
        # ---- sub-layer 1: relu(adj @ (acts @ W1) + b1)  (reassociated) ----
        xw = jnp.dot(acts.astype(bf16), w1_ref[l],
                     preferred_element_type=f32)            # (R, H) big MXU matmul
        b1 = b1_ref[l]                                      # (1, H)
        for s in range(tile_tb):                            # block-diagonal adj
            r0 = s * num_nodes
            blk = xw[r0:r0 + num_nodes, :]                  # (N, H)
            a = jnp.dot(adj, blk.astype(bf16), preferred_element_type=f32)
            h_ref[r0:r0 + num_nodes, :] = jnp.maximum(a + b1, 0.0)
        h = h_ref[...]

        # ---- sub-layer 2: relu(adj @ (h @ W2) + b2) ----
        hw = jnp.dot(h.astype(bf16), w2_ref[l],
                     preferred_element_type=f32)            # (R, Dout)
        b2 = b2_ref[l]
        for s in range(tile_tb):
            r0 = s * num_nodes
            blk = hw[r0:r0 + num_nodes, :]
            a = jnp.dot(adj, blk.astype(bf16), preferred_element_type=f32)
            h_ref[r0:r0 + num_nodes, :] = jnp.maximum(a + b2, 0.0)
        acts = h_ref[...]

    feats = acts.astype(o_ref.dtype)
    if agg_cat:
        # Fused `concat([x, feats], -1)`: one HBM output pass instead of a
        # separate XLA concat that would re-read both operands.
        # TODO(synk): for large graphs, folding N into the lane dim would make
        # this store fully lane-dense (multiple of 128 lanes).
        o_ref[:, :d_in] = x0.astype(o_ref.dtype)
        o_ref[:, d_in:] = feats
    else:
        o_ref[...] = (x0 + feats).astype(o_ref.dtype)


def _pick_tile_tb(tb, num_nodes, target_rows=512):
    """Largest divisor of tb whose row block obeys TPU tiling and keeps >=2
    grid steps when possible (v7x has 2 TensorCores)."""
    candidates = []
    for t in range(1, tb + 1):
        if tb % t != 0:
            continue
        rows = t * num_nodes
        # block second-to-last dim must be a multiple of 8 unless it spans
        # the full array
        if rows % 8 != 0 and t != tb:
            continue
        candidates.append(t)

    def score(t):
        rows = t * num_nodes
        grid_steps = tb // t
        return (rows <= target_rows,              # keep the block VMEM-sane
                grid_steps >= 2 or tb == 1,       # shard across v7x's 2 TCs
                rows)                             # then: as large as possible
    return max(candidates, key=score)


# ---------------------------------------------------------------------------
# Forward pass (mirrors StaticGraphEmbedding.forward)
# ---------------------------------------------------------------------------
@functools.partial(jax.jit, static_argnames=("agg_feats", "tile_tb", "interpret"))
def static_graph_embedding_forward(x, adj_norm, params, agg_feats="cat",
                                   tile_tb=None, interpret=False):
    """x: (T, B, N, input_dim); adj_norm: (N, N); params: list of
    (w1, b1, w2, b2) per DyGCN block."""
    T, B, N, d_in = x.shape
    d_out = params[0][2].shape[-1]
    assert d_in == d_out, (
        "StaticGraphEmbedding re-applies block 0 to its own output, which "
        "requires input_dim == output_dim (as in the PyTorch module).")
    assert len(params) >= 3, "forward hard-codes `for i in range(3)`"

    # PyTorch forward quirk, reproduced exactly: block 0 once, then blocks
    # 0, 1, 2 (hard-coded `for i in range(3)`); extra layers are ignored.
    order = (0,) + tuple(range(3))
    n_apps = len(order)
    n_blocks = 3                       # only the unique blocks go to VMEM

    # Stack the unique per-block weights; bf16 matmul inputs (f32 accumulation
    # happens inside the kernel); biases stay f32.
    w1s = jnp.stack([params[i][0] for i in range(n_blocks)]).astype(jnp.bfloat16)
    b1s = jnp.stack([params[i][1] for i in range(n_blocks)]).astype(jnp.float32)
    w2s = jnp.stack([params[i][2] for i in range(n_blocks)]).astype(jnp.bfloat16)
    b2s = jnp.stack([params[i][3] for i in range(n_blocks)]).astype(jnp.float32)
    adj_bf = adj_norm.astype(jnp.bfloat16)

    TB = T * B
    if tile_tb is None:
        tile_tb = _pick_tile_tb(TB, N)
    assert TB % tile_tb == 0
    grid_steps = TB // tile_tb
    rows = tile_tb * N
    hid = w1s.shape[-1]
    d_total = d_in + d_out if agg_feats == "cat" else d_out

    x2d = x.reshape(TB * N, d_in)

    kernel = functools.partial(
        _sge_fused_kernel, tile_tb=tile_tb, num_nodes=N, order=order,
        d_in=d_in, agg_cat=(agg_feats == "cat"))

    flops = 2 * n_apps * TB * N * (d_in * hid + N * hid + hid * d_out + N * d_out)
    bytes_accessed = (4 * x2d.size + 4 * TB * N * d_total
                      + 2 * (adj_bf.size + w1s.size + w2s.size)
                      + 4 * (b1s.size + b2s.size))

    out2d = pl.pallas_call(
        kernel,
        out_shape=jax.ShapeDtypeStruct((TB * N, d_total), x.dtype),
        grid=(grid_steps,),
        in_specs=[
            # Grid-invariant operands (constant index_map): adjacency + weights.
            # Pallas skips re-fetching when the block index does not change.
            pl.BlockSpec((N, N), lambda i: (0, 0)),
            pl.BlockSpec((rows, d_in), lambda i: (i, 0)),
            pl.BlockSpec((n_blocks, d_in, hid), lambda i: (0, 0, 0)),
            pl.BlockSpec((n_blocks, 1, hid), lambda i: (0, 0, 0)),
            pl.BlockSpec((n_blocks, hid, d_out), lambda i: (0, 0, 0)),
            pl.BlockSpec((n_blocks, 1, d_out), lambda i: (0, 0, 0)),
        ],
        out_specs=pl.BlockSpec((rows, d_total), lambda i: (i, 0)),
        scratch_shapes=[pltpu.VMEM((rows, d_out), jnp.float32)],
        compiler_params=pltpu.CompilerParams(
            dimension_semantics=("parallel",),
            vmem_limit_bytes=64 * 1024 * 1024),
        cost_estimate=pl.CostEstimate(flops=flops, transcendentals=0,
                                      bytes_accessed=bytes_accessed),
        interpret=interpret,
    )(adj_bf, x2d, w1s, b1s, w2s, b2s)

    return out2d.reshape(T, B, N, d_total)


# ---------------------------------------------------------------------------
# Parameter setup & plain-JAX reference (glue, outside the kernel)
# ---------------------------------------------------------------------------
def spectral_norm_tensor(adj):
    """Normalize the adjacency by its largest singular value."""
    s = jnp.linalg.norm(adj.astype(jnp.float32), ord=2)
    return adj / jnp.maximum(s, 1e-8)


def init_dygcn_params(key, in_dim, hidden_dim, out_dim):
    k1, k2 = jax.random.split(key)
    w1 = jax.random.normal(k1, (in_dim, hidden_dim), jnp.float32) / jnp.sqrt(
        jnp.float32(in_dim))
    b1 = jnp.zeros((1, hidden_dim), jnp.float32)
    w2 = jax.random.normal(k2, (hidden_dim, out_dim), jnp.float32) / jnp.sqrt(
        jnp.float32(hidden_dim))
    b2 = jnp.zeros((1, out_dim), jnp.float32)
    return (w1, b1, w2, b2)


def init_static_graph_embedding(key, num_nodes, input_dim, output_dim,
                                num_layers=3):
    keys = jax.random.split(key, num_layers)
    params = [init_dygcn_params(keys[0], input_dim, output_dim, output_dim)]
    for l in range(1, num_layers):
        params.append(init_dygcn_params(keys[l], output_dim, output_dim,
                                        output_dim))
    return params


def _dygcn_ref(h, adj, p):
    w1, b1, w2, b2 = p
    h = jax.nn.relu(jnp.einsum("ij,tbjf->tbif", adj, h) @ w1 + b1)
    h = jax.nn.relu(jnp.einsum("ij,tbjf->tbif", adj, h) @ w2 + b2)
    return h


def reference_forward(x, adj_norm, params, agg_feats="cat"):
    feats = _dygcn_ref(x, adj_norm, params[0])
    for i in range(3):
        feats = _dygcn_ref(feats, adj_norm, params[i])
    if agg_feats == "cat":
        return jnp.concatenate([x, feats], axis=-1)
    return x + feats


# ---------------------------------------------------------------------------
# Demo
# ---------------------------------------------------------------------------
if __name__ == "__main__":
    key = jax.random.PRNGKey(0)
    k_x, k_adj, k_p = jax.random.split(key, 3)

    T, B = 2, 2
    num_nodes = 8
    input_dim = 16
    output_dim = 16   # must equal input_dim because block 0 is applied twice
    num_layers = 3

    x = jax.random.normal(k_x, (T, B, num_nodes, input_dim), jnp.float32)

    # Deterministic synthetic adjacency (symmetric, with self-loops).
    adj_raw = (jax.random.uniform(k_adj, (num_nodes, num_nodes)) > 0.5
               ).astype(jnp.float32)
    adj_raw = jnp.maximum(adj_raw, adj_raw.T) + jnp.eye(num_nodes,
                                                        dtype=jnp.float32)
    adj_norm = spectral_norm_tensor(adj_raw)

    params = init_static_graph_embedding(k_p, num_nodes, input_dim,
                                         output_dim, num_layers)

    out = static_graph_embedding_forward(x, adj_norm, params,
                                         agg_feats="cat")
    out = jax.block_until_ready(out)

    expected_shape = (T, B, num_nodes, input_dim + output_dim)
    assert out.shape == expected_shape, (out.shape, expected_shape)
    assert bool(jnp.all(jnp.isfinite(out)))

    # Loose tolerance: kernel uses bf16 matmul inputs with f32 accumulation.
    ref = reference_forward(x, adj_norm, params, agg_feats="cat")
    err = float(jnp.max(jnp.abs(out - ref)))
    assert err < 0.25, err

    # Also exercise the 'sum' aggregation path once.
    out_sum = jax.block_until_ready(
        static_graph_embedding_forward(x, adj_norm, params, agg_feats="sum"))
    ref_sum = reference_forward(x, adj_norm, params, agg_feats="sum")
    err_sum = float(jnp.max(jnp.abs(out_sum - ref_sum)))
    assert out_sum.shape == (T, B, num_nodes, output_dim)
    assert err_sum < 0.25, err_sum

    print("KERNEL_OK")
</pallas_src>

<mosaic_0001>
module attributes {stable_mosaic.version = 11 : i64} {
  func.func @_sge_fused_kernel(%arg0: i32, %arg1: memref<8x8xbf16, #tpu.memory_space<vmem>>, %arg2: memref<16x16xf32, #tpu.memory_space<vmem>>, %arg3: memref<3x16x16xbf16, #tpu.memory_space<vmem>>, %arg4: memref<3x1x16xf32, #tpu.memory_space<vmem>>, %arg5: memref<3x16x16xbf16, #tpu.memory_space<vmem>>, %arg6: memref<3x1x16xf32, #tpu.memory_space<vmem>>, %arg7: memref<16x32xf32, #tpu.memory_space<vmem>>, %arg8: memref<16x16xf32, #tpu.memory_space<vmem>>) attributes {dimension_semantics = [#tpu.dimension_semantics<parallel>], iteration_bounds = array<i64: 2>, scalar_prefetch = 0 : i64, scratch_operands = 1 : i64, tpu.core_type = #tpu.core_type<tc>, window_params = [{pipeline_mode = #tpu.pipeline_mode<synchronous>, transform_indices = @transform_0, window_bounds = array<i64: 8, 8>}, {transform_indices = @transform_1, window_bounds = array<i64: 16, 16>}, {pipeline_mode = #tpu.pipeline_mode<synchronous>, transform_indices = @transform_2, window_bounds = array<i64: 3, 16, 16>}, {pipeline_mode = #tpu.pipeline_mode<synchronous>, transform_indices = @transform_3, window_bounds = array<i64: 3, 1, 16>}, {pipeline_mode = #tpu.pipeline_mode<synchronous>, transform_indices = @transform_4, window_bounds = array<i64: 3, 16, 16>}, {pipeline_mode = #tpu.pipeline_mode<synchronous>, transform_indices = @transform_5, window_bounds = array<i64: 3, 1, 16>}, {transform_indices = @transform_6, window_bounds = array<i64: 16, 32>}]} {
    %c0 = arith.constant 0 : index
    %c0_0 = arith.constant 0 : index
    %0 = vector.load %arg1[%c0, %c0_0] : memref<8x8xbf16, #tpu.memory_space<vmem>>, vector<8x8xbf16>
    %c0_1 = arith.constant 0 : index
    %c0_2 = arith.constant 0 : index
    %1 = vector.load %arg2[%c0_1, %c0_2] : memref<16x16xf32, #tpu.memory_space<vmem>>, vector<16x16xf32>
    %2 = arith.truncf %1 : vector<16x16xf32> to vector<16x16xbf16>
    %c0_3 = arith.constant 0 : index
    %c0_4 = arith.constant 0 : index
    %c0_5 = arith.constant 0 : index
    %3 = vector.load %arg3[%c0_3, %c0_4, %c0_5] : memref<3x16x16xbf16, #tpu.memory_space<vmem>>, vector<1x16x16xbf16>
    %4 = vector.shape_cast %3 : vector<1x16x16xbf16> to vector<16x16xbf16>
    %cst = arith.constant dense<0.000000e+00> : vector<16x16xf32>
    %5 = tpu.matmul %2, %4, %cst {dimension_numbers = #tpu.dot_dimension_numbers<[1], [0], [0], [1], [0, 0, 1, 1], [], []>} : vector<16x16xbf16>, vector<16x16xbf16>, vector<16x16xf32> -> vector<16x16xf32>
    %c0_6 = arith.constant 0 : index
    %c0_7 = arith.constant 0 : index
    %c0_8 = arith.constant 0 : index
    %6 = vector.load %arg4[%c0_6, %c0_7, %c0_8] : memref<3x1x16xf32, #tpu.memory_space<vmem>>, vector<1x1x16xf32>
    %7 = vector.shape_cast %6 : vector<1x1x16xf32> to vector<1x16xf32>
    %8 = vector.extract_strided_slice %5 {offsets = [0, 0], sizes = [8, 16], strides = [1, 1]} : vector<16x16xf32> to vector<8x16xf32>
    %9 = arith.truncf %8 : vector<8x16xf32> to vector<8x16xbf16>
    %cst_9 = arith.constant dense<0.000000e+00> : vector<8x16xf32>
    %10 = tpu.matmul %0, %9, %cst_9 {dimension_numbers = #tpu.dot_dimension_numbers<[1], [0], [0], [1], [0, 0, 1, 1], [], []>} : vector<8x8xbf16>, vector<8x16xbf16>, vector<8x16xf32> -> vector<8x16xf32>
    %11 = vector.broadcast %7 : vector<1x16xf32> to vector<8x16xf32>
    %12 = arith.addf %10, %11 : vector<8x16xf32>
    %cst_10 = arith.constant 0.000000e+00 : f32
    %13 = vector.broadcast %cst_10 : f32 to vector<8x16xf32>
    %14 = arith.maximumf %12, %13 : vector<8x16xf32>
    %c0_11 = arith.constant 0 : index
    %c0_12 = arith.constant 0 : index
    %15 = vector.load %arg8[%c0_11, %c0_12] : memref<16x16xf32, #tpu.memory_space<vmem>>, vector<8x16xf32>
    tpu.vector_store %arg8[%c0_11, %c0_12], %14 {strides = array<i32>} : memref<16x16xf32, #tpu.memory_space<vmem>>, vector<8x16xf32>,
    %16 = vector.extract_strided_slice %5 {offsets = [8, 0], sizes = [8, 16], strides = [1, 1]} : vector<16x16xf32> to vector<8x16xf32>
    %17 = arith.truncf %16 : vector<8x16xf32> to vector<8x16xbf16>
    %cst_13 = arith.constant dense<0.000000e+00> : vector<8x16xf32>
    %18 = tpu.matmul %0, %17, %cst_13 {dimension_numbers = #tpu.dot_dimension_numbers<[1], [0], [0], [1], [0, 0, 1, 1], [], []>} : vector<8x8xbf16>, vector<8x16xbf16>, vector<8x16xf32> -> vector<8x16xf32>
    %19 = vector.broadcast %7 : vector<1x16xf32> to vector<8x16xf32>
    %20 = arith.addf %18, %19 : vector<8x16xf32>
    %cst_14 = arith.constant 0.000000e+00 : f32
    %21 = vector.broadcast %cst_14 : f32 to vector<8x16xf32>
    %22 = arith.maximumf %20, %21 : vector<8x16xf32>
    %c8 = arith.constant 8 : index
    %c0_15 = arith.constant 0 : index
    %23 = vector.load %arg8[%c8, %c0_15] : memref<16x16xf32, #tpu.memory_space<vmem>>, vector<8x16xf32>
    tpu.vector_store %arg8[%c8, %c0_15], %22 {strides = array<i32>} : memref<16x16xf32, #tpu.memory_space<vmem>>, vector<8x16xf32>,
    %c0_16 = arith.constant 0 : index
    %c0_17 = arith.constant 0 : index
    %24 = vector.load %arg8[%c0_16, %c0_17] : memref<16x16xf32, #tpu.memory_space<vmem>>, vector<16x16xf32>
    %25 = arith.truncf %24 : vector<16x16xf32> to vector<16x16xbf16>
    %c0_18 = arith.constant 0 : index
    %c0_19 = arith.constant 0 : index
    %c0_20 = arith.constant 0 : index
    %26 = vector.load %arg5[%c0_18, %c0_19, %c0_20] : memref<3x16x16xbf16, #tpu.memory_space<vmem>>, vector<1x16x16xbf16>
    %27 = vector.shape_cast %26 : vector<1x16x16xbf16> to vector<16x16xbf16>
    %cst_21 = arith.constant dense<0.000000e+00> : vector<16x16xf32>
    %28 = tpu.matmul %25, %27, %cst_21 {dimension_numbers = #tpu.dot_dimension_numbers<[1], [0], [0], [1], [0, 0, 1, 1], [], []>} : vector<16x16xbf16>, vector<16x16xbf16>, vector<16x16xf32> -> vector<16x16xf32>
    %c0_22 = arith.constant 0 : index
    %c0_23 = arith.constant 0 : index
    %c0_24 = arith.constant 0 : index
    %29 = vector.load %arg6[%c0_22, %c0_23, %c0_24] : memref<3x1x16xf32, #tpu.memory_space<vmem>>, vector<1x1x16xf32>
    %30 = vector.shape_cast %29 : vector<1x1x16xf32> to vector<1x16xf32>
    %31 = vector.extract_strided_slice %28 {offsets = [0, 0], sizes = [8, 16], strides = [1, 1]} : vector<16x16xf32> to vector<8x16xf32>
    %32 = arith.truncf %31 : vector<8x16xf32> to vector<8x16xbf16>
    %cst_25 = arith.constant dense<0.000000e+00> : vector<8x16xf32>
    %33 = tpu.matmul %0, %32, %cst_25 {dimension_numbers = #tpu.dot_dimension_numbers<[1], [0], [0], [1], [0, 0, 1, 1], [], []>} : vector<8x8xbf16>, vector<8x16xbf16>, vector<8x16xf32> -> vector<8x16xf32>
    %34 = vector.broadcast %30 : vector<1x16xf32> to vector<8x16xf32>
    %35 = arith.addf %33, %34 : vector<8x16xf32>
    %cst_26 = arith.constant 0.000000e+00 : f32
    %36 = vector.broadcast %cst_26 : f32 to vector<8x16xf32>
    %37 = arith.maximumf %35, %36 : vector<8x16xf32>
    %c0_27 = arith.constant 0 : index
    %c0_28 = arith.constant 0 : index
    %38 = vector.load %arg8[%c0_27, %c0_28] : memref<16x16xf32, #tpu.memory_space<vmem>>, vector<8x16xf32>
    tpu.vector_store %arg8[%c0_27, %c0_28], %37 {strides = array<i32>} : memref<16x16xf32, #tpu.memory_space<vmem>>, vector<8x16xf32>,
    %39 = vector.extract_strided_slice %28 {offsets = [8, 0], sizes = [8, 16], strides = [1, 1]} : vector<16x16xf32> to vector<8x16xf32>
    %40 = arith.truncf %39 : vector<8x16xf32> to vector<8x16xbf16>
    %cst_29 = arith.constant dense<0.000000e+00> : vector<8x16xf32>
    %41 = tpu.matmul %0, %40, %cst_29 {dimension_numbers = #tpu.dot_dimension_numbers<[1], [0], [0], [1], [0, 0, 1, 1], [], []>} : vector<8x8xbf16>, vector<8x16xbf16>, vector<8x16xf32> -> vector<8x16xf32>
    %42 = vector.broadcast %30 : vector<1x16xf32> to vector<8x16xf32>
    %43 = arith.addf %41, %42 : vector<8x16xf32>
    %cst_30 = arith.constant 0.000000e+00 : f32
    %44 = vector.broadcast %cst_30 : f32 to vector<8x16xf32>
    %45 = arith.maximumf %43, %44 : vector<8x16xf32>
    %c8_31 = arith.constant 8 : index
    %c0_32 = arith.constant 0 : index
    %46 = vector.load %arg8[%c8_31, %c0_32] : memref<16x16xf32, #tpu.memory_space<vmem>>, vector<8x16xf32>
    tpu.vector_store %arg8[%c8_31, %c0_32], %45 {strides = array<i32>} : memref<16x16xf32, #tpu.memory_space<vmem>>, vector<8x16xf32>,
    %c0_33 = arith.constant 0 : index
    %c0_34 = arith.constant 0 : index
    %47 = vector.load %arg8[%c0_33, %c0_34] : memref<16x16xf32, #tpu.memory_space<vmem>>, vector<16x16xf32>
    %48 = arith.truncf %47 : vector<16x16xf32> to vector<16x16xbf16>
    %c0_35 = arith.constant 0 : index
    %c0_36 = arith.constant 0 : index
    %c0_37 = arith.constant 0 : index
    %49 = vector.load %arg3[%c0_35, %c0_36, %c0_37] : memref<3x16x16xbf16, #tpu.memory_space<vmem>>, vector<1x16x16xbf16>
    %50 = vector.shape_cast %49 : vector<1x16x16xbf16> to vector<16x16xbf16>
    %cst_38 = arith.constant dense<0.000000e+00> : vector<16x16xf32>
    %51 = tpu.matmul %48, %50, %cst_38 {dimension_numbers = #tpu.dot_dimension_numbers<[1], [0], [0], [1], [0, 0, 1, 1], [], []>} : vector<16x16xbf16>, vector<16x16xbf16>, vector<16x16xf32> -> vector<16x16xf32>
    %c0_39 = arith.constant 0 : index
    %c0_40 = arith.constant 0 : index
    %c0_41 = arith.constant 0 : index
    %52 = vector.load %arg4[%c0_39, %c0_40, %c0_41] : memref<3x1x16xf32, #tpu.memory_space<vmem>>, vector<1x1x16xf32>
    %53 = vector.shape_cast %52 : vector<1x1x16xf32> to vector<1x16xf32>
    %54 = vector.extract_strided_slice %51 {offsets = [0, 0], sizes = [8, 16], strides = [1, 1]} : vector<16x16xf32> to vector<8x16xf32>
    %55 = arith.truncf %54 : vector<8x16xf32> to vector<8x16xbf16>
    %cst_42 = arith.constant dense<0.000000e+00> : vector<8x16xf32>
    %56 = tpu.matmul %0, %55, %cst_42 {dimension_numbers = #tpu.dot_dimension_numbers<[1], [0], [0], [1], [0, 0, 1, 1], [], []>} : vector<8x8xbf16>, vector<8x16xbf16>, vector<8x16xf32> -> vector<8x16xf32>
    %57 = vector.broadcast %53 : vector<1x16xf32> to vector<8x16xf32>
    %58 = arith.addf %56, %57 : vector<8x16xf32>
    %cst_43 = arith.constant 0.000000e+00 : f32
    %59 = vector.broadcast %cst_43 : f32 to vector<8x16xf32>
    %60 = arith.maximumf %58, %59 : vector<8x16xf32>
    %c0_44 = arith.constant 0 : index
    %c0_45 = arith.constant 0 : index
    %61 = vector.load %arg8[%c0_44, %c0_45] : memref<16x16xf32, #tpu.memory_space<vmem>>, vector<8x16xf32>
    tpu.vector_store %arg8[%c0_44, %c0_45], %60 {strides = array<i32>} : memref<16x16xf32, #tpu.memory_space<vmem>>, vector<8x16xf32>,
    %62 = vector.extract_strided_slice %51 {offsets = [8, 0], sizes = [8, 16], strides = [1, 1]} : vector<16x16xf32> to vector<8x16xf32>
    %63 = arith.truncf %62 : vector<8x16xf32> to vector<8x16xbf16>
    %cst_46 = arith.constant dense<0.000000e+00> : vector<8x16xf32>
    %64 = tpu.matmul %0, %63, %cst_46 {dimension_numbers = #tpu.dot_dimension_numbers<[1], [0], [0], [1], [0, 0, 1, 1], [], []>} : vector<8x8xbf16>, vector<8x16xbf16>, vector<8x16xf32> -> vector<8x16xf32>
    %65 = vector.broadcast %53 : vector<1x16xf32> to vector<8x16xf32>
    %66 = arith.addf %64, %65 : vector<8x16xf32>
    %cst_47 = arith.constant 0.000000e+00 : f32
    %67 = vector.broadcast %cst_47 : f32 to vector<8x16xf32>
    %68 = arith.maximumf %66, %67 : vector<8x16xf32>
    %c8_48 = arith.constant 8 : index
    %c0_49 = arith.constant 0 : index
    %69 = vector.load %arg8[%c8_48, %c0_49] : memref<16x16xf32, #tpu.memory_space<vmem>>, vector<8x16xf32>
    tpu.vector_store %arg8[%c8_48, %c0_49], %68 {strides = array<i32>} : memref<16x16xf32, #tpu.memory_space<vmem>>, vector<8x16xf32>,
    %c0_50 = arith.constant 0 : index
    %c0_51 = arith.constant 0 : index
    %70 = vector.load %arg8[%c0_50, %c0_51] : memref<16x16xf32, #tpu.memory_space<vmem>>, vector<16x16xf32>
    %71 = arith.truncf %70 : vector<16x16xf32> to vector<16x16xbf16>
    %c0_52 = arith.constant 0 : index
    %c0_53 = arith.constant 0 : index
    %c0_54 = arith.constant 0 : index
    %72 = vector.load %arg5[%c0_52, %c0_53, %c0_54] : memref<3x16x16xbf16, #tpu.memory_space<vmem>>, vector<1x16x16xbf16>
    %73 = vector.shape_cast %72 : vector<1x16x16xbf16> to vector<16x16xbf16>
    %cst_55 = arith.constant dense<0.000000e+00> : vector<16x16xf32>
    %74 = tpu.matmul %71, %73, %cst_55 {dimension_numbers = #tpu.dot_dimension_numbers<[1], [0], [0], [1], [0, 0, 1, 1], [], []>} : vector<16x16xbf16>, vector<16x16xbf16>, vector<16x16xf32> -> vector<16x16xf32>
    %c0_56 = arith.constant 0 : index
    %c0_57 = arith.constant 0 : index
    %c0_58 = arith.constant 0 : index
    %75 = vector.load %arg6[%c0_56, %c0_57, %c0_58] : memref<3x1x16xf32, #tpu.memory_space<vmem>>, vector<1x1x16xf32>
    %76 = vector.shape_cast %75 : vector<1x1x16xf32> to vector<1x16xf32>
    %77 = vector.extract_strided_slice %74 {offsets = [0, 0], sizes = [8, 16], strides = [1, 1]} : vector<16x16xf32> to vector<8x16xf32>
    %78 = arith.truncf %77 : vector<8x16xf32> to vector<8x16xbf16>
    %cst_59 = arith.constant dense<0.000000e+00> : vector<8x16xf32>
    %79 = tpu.matmul %0, %78, %cst_59 {dimension_numbers = #tpu.dot_dimension_numbers<[1], [0], [0], [1], [0, 0, 1, 1], [], []>} : vector<8x8xbf16>, vector<8x16xbf16>, vector<8x16xf32> -> vector<8x16xf32>
    %80 = vector.broadcast %76 : vector<1x16xf32> to vector<8x16xf32>
    %81 = arith.addf %79, %80 : vector<8x16xf32>
    %cst_60 = arith.constant 0.000000e+00 : f32
    %82 = vector.broadcast %cst_60 : f32 to vector<8x16xf32>
    %83 = arith.maximumf %81, %82 : vector<8x16xf32>
    %c0_61 = arith.constant 0 : index
    %c0_62 = arith.constant 0 : index
    %84 = vector.load %arg8[%c0_61, %c0_62] : memref<16x16xf32, #tpu.memory_space<vmem>>, vector<8x16xf32>
    tpu.vector_store %arg8[%c0_61, %c0_62], %83 {strides = array<i32>} : memref<16x16xf32, #tpu.memory_space<vmem>>, vector<8x16xf32>,
    %85 = vector.extract_strided_slice %74 {offsets = [8, 0], sizes = [8, 16], strides = [1, 1]} : vector<16x16xf32> to vector<8x16xf32>
    %86 = arith.truncf %85 : vector<8x16xf32> to vector<8x16xbf16>
    %cst_63 = arith.constant dense<0.000000e+00> : vector<8x16xf32>
    %87 = tpu.matmul %0, %86, %cst_63 {dimension_numbers = #tpu.dot_dimension_numbers<[1], [0], [0], [1], [0, 0, 1, 1], [], []>} : vector<8x8xbf16>, vector<8x16xbf16>, vector<8x16xf32> -> vector<8x16xf32>
    %88 = vector.broadcast %76 : vector<1x16xf32> to vector<8x16xf32>
    %89 = arith.addf %87, %88 : vector<8x16xf32>
    %cst_64 = arith.constant 0.000000e+00 : f32
    %90 = vector.broadcast %cst_64 : f32 to vector<8x16xf32>
    %91 = arith.maximumf %89, %90 : vector<8x16xf32>
    %c8_65 = arith.constant 8 : index
    %c0_66 = arith.constant 0 : index
    %92 = vector.load %arg8[%c8_65, %c0_66] : memref<16x16xf32, #tpu.memory_space<vmem>>, vector<8x16xf32>
    tpu.vector_store %arg8[%c8_65, %c0_66], %91 {strides = array<i32>} : memref<16x16xf32, #tpu.memory_space<vmem>>, vector<8x16xf32>,
    %c0_67 = arith.constant 0 : index
    %c0_68 = arith.constant 0 : index
    %93 = vector.load %arg8[%c0_67, %c0_68] : memref<16x16xf32, #tpu.memory_space<vmem>>, vector<16x16xf32>
    %94 = arith.truncf %93 : vector<16x16xf32> to vector<16x16xbf16>
    %c1 = arith.constant 1 : index
    %c0_69 = arith.constant 0 : index
    %c0_70 = arith.constant 0 : index
    %95 = vector.load %arg3[%c1, %c0_69, %c0_70] : memref<3x16x16xbf16, #tpu.memory_space<vmem>>, vector<1x16x16xbf16>
    %96 = vector.shape_cast %95 : vector<1x16x16xbf16> to vector<16x16xbf16>
    %cst_71 = arith.constant dense<0.000000e+00> : vector<16x16xf32>
    %97 = tpu.matmul %94, %96, %cst_71 {dimension_numbers = #tpu.dot_dimension_numbers<[1], [0], [0], [1], [0, 0, 1, 1], [], []>} : vector<16x16xbf16>, vector<16x16xbf16>, vector<16x16xf32> -> vector<16x16xf32>
    %c1_72 = arith.constant 1 : index
    %c0_73 = arith.constant 0 : index
    %c0_74 = arith.constant 0 : index
    %98 = vector.load %arg4[%c1_72, %c0_73, %c0_74] : memref<3x1x16xf32, #tpu.memory_space<vmem>>, vector<1x1x16xf32>
    %99 = vector.shape_cast %98 : vector<1x1x16xf32> to vector<1x16xf32>
    %100 = vector.extract_strided_slice %97 {offsets = [0, 0], sizes = [8, 16], strides = [1, 1]} : vector<16x16xf32> to vector<8x16xf32>
    %101 = arith.truncf %100 : vector<8x16xf32> to vector<8x16xbf16>
    %cst_75 = arith.constant dense<0.000000e+00> : vector<8x16xf32>
    %102 = tpu.matmul %0, %101, %cst_75 {dimension_numbers = #tpu.dot_dimension_numbers<[1], [0], [0], [1], [0, 0, 1, 1], [], []>} : vector<8x8xbf16>, vector<8x16xbf16>, vector<8x16xf32> -> vector<8x16xf32>
    %103 = vector.broadcast %99 : vector<1x16xf32> to vector<8x16xf32>
    %104 = arith.addf %102, %103 : vector<8x16xf32>
    %cst_76 = arith.constant 0.000000e+00 : f32
    %105 = vector.broadcast %cst_76 : f32 to vector<8x16xf32>
    %106 = arith.maximumf %104, %105 : vector<8x16xf32>
    %c0_77 = arith.constant 0 : index
    %c0_78 = arith.constant 0 : index
    %107 = vector.load %arg8[%c0_77, %c0_78] : memref<16x16xf32, #tpu.memory_space<vmem>>, vector<8x16xf32>
    tpu.vector_store %arg8[%c0_77, %c0_78], %106 {strides = array<i32>} : memref<16x16xf32, #tpu.memory_space<vmem>>, vector<8x16xf32>,
    %108 = vector.extract_strided_slice %97 {offsets = [8, 0], sizes = [8, 16], strides = [1, 1]} : vector<16x16xf32> to vector<8x16xf32>
    %109 = arith.truncf %108 : vector<8x16xf32> to vector<8x16xbf16>
    %cst_79 = arith.constant dense<0.000000e+00> : vector<8x16xf32>
    %110 = tpu.matmul %0, %109, %cst_79 {dimension_numbers = #tpu.dot_dimension_numbers<[1], [0], [0], [1], [0, 0, 1, 1], [], []>} : vector<8x8xbf16>, vector<8x16xbf16>, vector<8x16xf32> -> vector<8x16xf32>
    %111 = vector.broadcast %99 : vector<1x16xf32> to vector<8x16xf32>
    %112 = arith.addf %110, %111 : vector<8x16xf32>
    %cst_80 = arith.constant 0.000000e+00 : f32
    %113 = vector.broadcast %cst_80 : f32 to vector<8x16xf32>
    %114 = arith.maximumf %112, %113 : vector<8x16xf32>
    %c8_81 = arith.constant 8 : index
    %c0_82 = arith.constant 0 : index
    %115 = vector.load %arg8[%c8_81, %c0_82] : memref<16x16xf32, #tpu.memory_space<vmem>>, vector<8x16xf32>
    tpu.vector_store %arg8[%c8_81, %c0_82], %114 {strides = array<i32>} : memref<16x16xf32, #tpu.memory_space<vmem>>, vector<8x16xf32>,
    %c0_83 = arith.constant 0 : index
    %c0_84 = arith.constant 0 : index
    %116 = vector.load %arg8[%c0_83, %c0_84] : memref<16x16xf32, #tpu.memory_space<vmem>>, vector<16x16xf32>
    %117 = arith.truncf %116 : vector<16x16xf32> to vector<16x16xbf16>
    %c1_85 = arith.constant 1 : index
    %c0_86 = arith.constant 0 : index
    %c0_87 = arith.constant 0 : index
    %118 = vector.load %arg5[%c1_85, %c0_86, %c0_87] : memref<3x16x16xbf16, #tpu.memory_space<vmem>>, vector<1x16x16xbf16>
    %119 = vector.shape_cast %118 : vector<1x16x16xbf16> to vector<16x16xbf16>
    %cst_88 = arith.constant dense<0.000000e+00> : vector<16x16xf32>
    %120 = tpu.matmul %117, %119, %cst_88 {dimension_numbers = #tpu.dot_dimension_numbers<[1], [0], [0], [1], [0, 0, 1, 1], [], []>} : vector<16x16xbf16>, vector<16x16xbf16>, vector<16x16xf32> -> vector<16x16xf32>
    %c1_89 = arith.constant 1 : index
    %c0_90 = arith.constant 0 : index
    %c0_91 = arith.constant 0 : index
    %121 = vector.load %arg6[%c1_89, %c0_90, %c0_91] : memref<3x1x16xf32, #tpu.memory_space<vmem>>, vector<1x1x16xf32>
    %122 = vector.shape_cast %121 : vector<1x1x16xf32> to vector<1x16xf32>
    %123 = vector.extract_strided_slice %120 {offsets = [0, 0], sizes = [8, 16], strides = [1, 1]} : vector<16x16xf32> to vector<8x16xf32>
    %124 = arith.truncf %123 : vector<8x16xf32> to vector<8x16xbf16>
    %cst_92 = arith.constant dense<0.000000e+00> : vector<8x16xf32>
    %125 = tpu.matmul %0, %124, %cst_92 {dimension_numbers = #tpu.dot_dimension_numbers<[1], [0], [0], [1], [0, 0, 1, 1], [], []>} : vector<8x8xbf16>, vector<8x16xbf16>, vector<8x16xf32> -> vector<8x16xf32>
    %126 = vector.broadcast %122 : vector<1x16xf32> to vector<8x16xf32>
    %127 = arith.addf %125, %126 : vector<8x16xf32>
    %cst_93 = arith.constant 0.000000e+00 : f32
    %128 = vector.broadcast %cst_93 : f32 to vector<8x16xf32>
    %129 = arith.maximumf %127, %128 : vector<8x16xf32>
    %c0_94 = arith.constant 0 : index
    %c0_95 = arith.constant 0 : index
    %130 = vector.load %arg8[%c0_94, %c0_95] : memref<16x16xf32, #tpu.memory_space<vmem>>, vector<8x16xf32>
    tpu.vector_store %arg8[%c0_94, %c0_95], %129 {strides = array<i32>} : memref<16x16xf32, #tpu.memory_space<vmem>>, vector<8x16xf32>,
    %131 = vector.extract_strided_slice %120 {offsets = [8, 0], sizes = [8, 16], strides = [1, 1]} : vector<16x16xf32> to vector<8x16xf32>
    %132 = arith.truncf %131 : vector<8x16xf32> to vector<8x16xbf16>
    %cst_96 = arith.constant dense<0.000000e+00> : vector<8x16xf32>
    %133 = tpu.matmul %0, %132, %cst_96 {dimension_numbers = #tpu.dot_dimension_numbers<[1], [0], [0], [1], [0, 0, 1, 1], [], []>} : vector<8x8xbf16>, vector<8x16xbf16>, vector<8x16xf32> -> vector<8x16xf32>
    %134 = vector.broadcast %122 : vector<1x16xf32> to vector<8x16xf32>
    %135 = arith.addf %133, %134 : vector<8x16xf32>
    %cst_97 = arith.constant 0.000000e+00 : f32
    %136 = vector.broadcast %cst_97 : f32 to vector<8x16xf32>
    %137 = arith.maximumf %135, %136 : vector<8x16xf32>
    %c8_98 = arith.constant 8 : index
    %c0_99 = arith.constant 0 : index
    %138 = vector.load %arg8[%c8_98, %c0_99] : memref<16x16xf32, #tpu.memory_space<vmem>>, vector<8x16xf32>
    tpu.vector_store %arg8[%c8_98, %c0_99], %137 {strides = array<i32>} : memref<16x16xf32, #tpu.memory_space<vmem>>, vector<8x16xf32>,
    %c0_100 = arith.constant 0 : index
    %c0_101 = arith.constant 0 : index
    %139 = vector.load %arg8[%c0_100, %c0_101] : memref<16x16xf32, #tpu.memory_space<vmem>>, vector<16x16xf32>
    %140 = arith.truncf %139 : vector<16x16xf32> to vector<16x16xbf16>
    %c2 = arith.constant 2 : index
    %c0_102 = arith.constant 0 : index
    %c0_103 = arith.constant 0 : index
    %141 = vector.load %arg3[%c2, %c0_102, %c0_103] : memref<3x16x16xbf16, #tpu.memory_space<vmem>>, vector<1x16x16xbf16>
    %142 = vector.shape_cast %141 : vector<1x16x16xbf16> to vector<16x16xbf16>
    %cst_104 = arith.constant dense<0.000000e+00> : vector<16x16xf32>
    %143 = tpu.matmul %140, %142, %cst_104 {dimension_numbers = #tpu.dot_dimension_numbers<[1], [0], [0], [1], [0, 0, 1, 1], [], []>} : vector<16x16xbf16>, vector<16x16xbf16>, vector<16x16xf32> -> vector<16x16xf32>
    %c2_105 = arith.constant 2 : index
    %c0_106 = arith.constant 0 : index
    %c0_107 = arith.constant 0 : index
    %144 = vector.load %arg4[%c2_105, %c0_106, %c0_107] : memref<3x1x16xf32, #tpu.memory_space<vmem>>, vector<1x1x16xf32>
    %145 = vector.shape_cast %144 : vector<1x1x16xf32> to vector<1x16xf32>
    %146 = vector.extract_strided_slice %143 {offsets = [0, 0], sizes = [8, 16], strides = [1, 1]} : vector<16x16xf32> to vector<8x16xf32>
    %147 = arith.truncf %146 : vector<8x16xf32> to vector<8x16xbf16>
    %cst_108 = arith.constant dense<0.000000e+00> : vector<8x16xf32>
    %148 = tpu.matmul %0, %147, %cst_108 {dimension_numbers = #tpu.dot_dimension_numbers<[1], [0], [0], [1], [0, 0, 1, 1], [], []>} : vector<8x8xbf16>, vector<8x16xbf16>, vector<8x16xf32> -> vector<8x16xf32>
    %149 = vector.broadcast %145 : vector<1x16xf32> to vector<8x16xf32>
    %150 = arith.addf %148, %149 : vector<8x16xf32>
    %cst_109 = arith.constant 0.000000e+00 : f32
    %151 = vector.broadcast %cst_109 : f32 to vector<8x16xf32>
    %152 = arith.maximumf %150, %151 : vector<8x16xf32>
    %c0_110 = arith.constant 0 : index
    %c0_111 = arith.constant 0 : index
    %153 = vector.load %arg8[%c0_110, %c0_111] : memref<16x16xf32, #tpu.memory_space<vmem>>, vector<8x16xf32>
    tpu.vector_store %arg8[%c0_110, %c0_111], %152 {strides = array<i32>} : memref<16x16xf32, #tpu.memory_space<vmem>>, vector<8x16xf32>,
    %154 = vector.extract_strided_slice %143 {offsets = [8, 0], sizes = [8, 16], strides = [1, 1]} : vector<16x16xf32> to vector<8x16xf32>
    %155 = arith.truncf %154 : vector<8x16xf32> to vector<8x16xbf16>
    %cst_112 = arith.constant dense<0.000000e+00> : vector<8x16xf32>
    %156 = tpu.matmul %0, %155, %cst_112 {dimension_numbers = #tpu.dot_dimension_numbers<[1], [0], [0], [1], [0, 0, 1, 1], [], []>} : vector<8x8xbf16>, vector<8x16xbf16>, vector<8x16xf32> -> vector<8x16xf32>
    %157 = vector.broadcast %145 : vector<1x16xf32> to vector<8x16xf32>
    %158 = arith.addf %156, %157 : vector<8x16xf32>
    %cst_113 = arith.constant 0.000000e+00 : f32
    %159 = vector.broadcast %cst_113 : f32 to vector<8x16xf32>
    %160 = arith.maximumf %158, %159 : vector<8x16xf32>
    %c8_114 = arith.constant 8 : index
    %c0_115 = arith.constant 0 : index
    %161 = vector.load %arg8[%c8_114, %c0_115] : memref<16x16xf32, #tpu.memory_space<vmem>>, vector<8x16xf32>
    tpu.vector_store %arg8[%c8_114, %c0_115], %160 {strides = array<i32>} : memref<16x16xf32, #tpu.memory_space<vmem>>, vector<8x16xf32>,
    %c0_116 = arith.constant 0 : index
    %c0_117 = arith.constant 0 : index
    %162 = vector.load %arg8[%c0_116, %c0_117] : memref<16x16xf32, #tpu.memory_space<vmem>>, vector<16x16xf32>
    %163 = arith.truncf %162 : vector<16x16xf32> to vector<16x16xbf16>
    %c2_118 = arith.constant 2 : index
    %c0_119 = arith.constant 0 : index
    %c0_120 = arith.constant 0 : index
    %164 = vector.load %arg5[%c2_118, %c0_119, %c0_120] : memref<3x16x16xbf16, #tpu.memory_space<vmem>>, vector<1x16x16xbf16>
    %165 = vector.shape_cast %164 : vector<1x16x16xbf16> to vector<16x16xbf16>
    %cst_121 = arith.constant dense<0.000000e+00> : vector<16x16xf32>
    %166 = tpu.matmul %163, %165, %cst_121 {dimension_numbers = #tpu.dot_dimension_numbers<[1], [0], [0], [1], [0, 0, 1, 1], [], []>} : vector<16x16xbf16>, vector<16x16xbf16>, vector<16x16xf32> -> vector<16x16xf32>
    %c2_122 = arith.constant 2 : index
    %c0_123 = arith.constant 0 : index
    %c0_124 = arith.constant 0 : index
    %167 = vector.load %arg6[%c2_122, %c0_123, %c0_124] : memref<3x1x16xf32, #tpu.memory_space<vmem>>, vector<1x1x16xf32>
    %168 = vector.shape_cast %167 : vector<1x1x16xf32> to vector<1x16xf32>
    %169 = vector.extract_strided_slice %166 {offsets = [0, 0], sizes = [8, 16], strides = [1, 1]} : vector<16x16xf32> to vector<8x16xf32>
    %170 = arith.truncf %169 : vector<8x16xf32> to vector<8x16xbf16>
    %cst_125 = arith.constant dense<0.000000e+00> : vector<8x16xf32>
    %171 = tpu.matmul %0, %170, %cst_125 {dimension_numbers = #tpu.dot_dimension_numbers<[1], [0], [0], [1], [0, 0, 1, 1], [], []>} : vector<8x8xbf16>, vector<8x16xbf16>, vector<8x16xf32> -> vector<8x16xf32>
    %172 = vector.broadcast %168 : vector<1x16xf32> to vector<8x16xf32>
    %173 = arith.addf %171, %172 : vector<8x16xf32>
    %cst_126 = arith.constant 0.000000e+00 : f32
    %174 = vector.broadcast %cst_126 : f32 to vector<8x16xf32>
    %175 = arith.maximumf %173, %174 : vector<8x16xf32>
    %c0_127 = arith.constant 0 : index
    %c0_128 = arith.constant 0 : index
    %176 = vector.load %arg8[%c0_127, %c0_128] : memref<16x16xf32, #tpu.memory_space<vmem>>, vector<8x16xf32>
    tpu.vector_store %arg8[%c0_127, %c0_128], %175 {strides = array<i32>} : memref<16x16xf32, #tpu.memory_space<vmem>>, vector<8x16xf32>,
    %177 = vector.extract_strided_slice %166 {offsets = [8, 0], sizes = [8, 16], strides = [1, 1]} : vector<16x16xf32> to vector<8x16xf32>
    %178 = arith.truncf %177 : vector<8x16xf32> to vector<8x16xbf16>
    %cst_129 = arith.constant dense<0.000000e+00> : vector<8x16xf32>
    %179 = tpu.matmul %0, %178, %cst_129 {dimension_numbers = #tpu.dot_dimension_numbers<[1], [0], [0], [1], [0, 0, 1, 1], [], []>} : vector<8x8xbf16>, vector<8x16xbf16>, vector<8x16xf32> -> vector<8x16xf32>
    %180 = vector.broadcast %168 : vector<1x16xf32> to vector<8x16xf32>
    %181 = arith.addf %179, %180 : vector<8x16xf32>
    %cst_130 = arith.constant 0.000000e+00 : f32
    %182 = vector.broadcast %cst_130 : f32 to vector<8x16xf32>
    %183 = arith.maximumf %181, %182 : vector<8x16xf32>
    %c8_131 = arith.constant 8 : index
    %c0_132 = arith.constant 0 : index
    %184 = vector.load %arg8[%c8_131, %c0_132] : memref<16x16xf32, #tpu.memory_space<vmem>>, vector<8x16xf32>
    tpu.vector_store %arg8[%c8_131, %c0_132], %183 {strides = array<i32>} : memref<16x16xf32, #tpu.memory_space<vmem>>, vector<8x16xf32>,
    %c0_133 = arith.constant 0 : index
    %c0_134 = arith.constant 0 : index
    %185 = vector.load %arg8[%c0_133, %c0_134] : memref<16x16xf32, #tpu.memory_space<vmem>>, vector<16x16xf32>
    %c0_135 = arith.constant 0 : index
    %c0_136 = arith.constant 0 : index
    %186 = vector.load %arg7[%c0_135, %c0_136] : memref<16x32xf32, #tpu.memory_space<vmem>>, vector<16x16xf32>
    tpu.vector_store %arg7[%c0_135, %c0_136], %1 {strides = array<i32>} : memref<16x32xf32, #tpu.memory_space<vmem>>, vector<16x16xf32>,
    %c0_137 = arith.constant 0 : index
    %c16 = arith.constant 16 : index
    %187 = vector.load %arg7[%c0_137, %c16] : memref<16x32xf32, #tpu.memory_space<vmem>>, vector<16x16xf32>
    tpu.vector_store %arg7[%c0_137, %c16], %185 {strides = array<i32>} : memref<16x32xf32, #tpu.memory_space<vmem>>, vector<16x16xf32>,
    return
  }
  func.func @transform_0(%arg0: i32) -> (i32, i32) {
    %c0_i32 = arith.constant 0 : i32
    %c0_i32_0 = arith.constant 0 : i32
    %c0_i32_1 = arith.constant 0 : i32
    return %c0_i32, %c0_i32_0 : i32, i32
  }
  func.func @transform_1(%arg0: i32) -> (i32, i32) {
    %c0_i32 = arith.constant 0 : i32
    %c0_i32_0 = arith.constant 0 : i32
    return %arg0, %c0_i32 : i32, i32
  }
  func.func @transform_2(%arg0: i32) -> (i32, i32, i32) {
    %c0_i32 = arith.constant 0 : i32
    %c0_i32_0 = arith.constant 0 : i32
    %c0_i32_1 = arith.constant 0 : i32
    %c0_i32_2 = arith.constant 0 : i32
    return %c0_i32, %c0_i32_0, %c0_i32_1 : i32, i32, i32
  }
  func.func @transform_3(%arg0: i32) -> (i32, i32, i32) {
    %c0_i32 = arith.constant 0 : i32
    %c0_i32_0 = arith.constant 0 : i32
    %c0_i32_1 = arith.constant 0 : i32
    %c0_i32_2 = arith.constant 0 : i32
    return %c0_i32, %c0_i32_0, %c0_i32_1 : i32, i32, i32
  }
  func.func @transform_4(%arg0: i32) -> (i32, i32, i32) {
    %c0_i32 = arith.constant 0 : i32
    %c0_i32_0 = arith.constant 0 : i32
    %c0_i32_1 = arith.constant 0 : i32
    %c0_i32_2 = arith.constant 0 : i32
    return %c0_i32, %c0_i32_0, %c0_i32_1 : i32, i32, i32
  }
  func.func @transform_5(%arg0: i32) -> (i32, i32, i32) {
    %c0_i32 = arith.constant 0 : i32
    %c0_i32_0 = arith.constant 0 : i32
    %c0_i32_1 = arith.constant 0 : i32
    %c0_i32_2 = arith.constant 0 : i32
    return %c0_i32, %c0_i32_0, %c0_i32_1 : i32, i32, i32
  }
  func.func @transform_6(%arg0: i32) -> (i32, i32) {
    %c0_i32 = arith.constant 0 : i32
    %c0_i32_0 = arith.constant 0 : i32
    return %arg0, %c0_i32 : i32, i32
  }
}

</mosaic_0001>

<bundles_post_ra>
// kernel: static_graph_embedding_forward.1
= control target key start
LH: loop header
LB: loop body
LE: loop exit
PB: predicated region body
PF: predicated region fallthrough
CT: control target
= control target key end

     0   :  { %11 = vsyncpa [#allocation4], 0  ;;  %s1385_s0 = inlined_call_operand.vmem [shape: bf16[8,8], index: 0, kind: input, shape index: {}]   ;;  %s1386_s1 = inlined_call_operand.vmem [shape: f32[32,16], index: 1, kind: input, shape index: {}]   ;;  %s1387_s2 = inlined_call_operand.vmem [shape: bf16[3,16,16], index: 2, kind: input, shape index: {}]   ;;  %s1388_s3 = inlined_call_operand.vmem [shape: f32[3,1,16], index: 3, kind: input, shape index: {}]   ;;  %s1389_s4 = inlined_call_operand.vmem [shape: bf16[3,16,16], index: 4, kind: input, shape index: {}]   ;;  %s1390_s5 = inlined_call_operand.vmem [shape: f32[3,1,16], index: 5, kind: input, shape index: {}]   ;;  %s1391_s6 = inlined_call_operand.hbm [shape: f32[32,32], index: 6, kind: output, shape index: {}]  }
   0x1   :  { %13 = vsyncpa [#allocation4 + $0x1], 0  ;;  %s1163_s21 = smov 0   ;;  %s1165_s22 = smov 0  }
   0x2   :  { %s1167_s23 = smov 0   ;;  %s1169_s24 = smov 0  }
   0x3 LB: > { %s1184_s25 = sadd.s32 4294967295, %s1123_s24   ;;  %s922_s26 = sadd.s32 4294967294, %s1123_s24   ;;  %s1123_s24 = sphi %s1169_s24, %s1397_s24   ;;  %s1119_s23 = sphi %s1167_s23, %s1396_s23   ;;  %s1115_s22 = sphi %s1165_s22, %s1395_s22   ;;  %s1111_s21 = sphi %s1163_s21, %s1394_s21  }
   0x4   : > { %s1188_s27 = sadd.s32 1, %s1123_s24   ;;  %s157_s28 = sadd.s32 1, %s1119_s23 }
   0x5   : > { %s154_s29 = ssub.s32 %s1123_s24, %s1188_s27  ;;  %p167_p0 = scmp.ne.s32.totalorder %s1119_s23, %s1115_s22 }
   0x6   : > { %p155_p1 = scmp.eq.s32.totalorder %s154_s29, 0  ;;  %p168_p2 = scmp.eq.s32.totalorder %s1184_s25, 1 }
   0x7   : > { %p173_p3 = scmp.ne.s32.totalorder %s1115_s22, %s1111_s21  ;;  %p174_p4 = scmp.eq.s32.totalorder %s922_s26, 1 }
   0x8   : > { %s1199_s30 = scalar_select %p155_p1, %s1119_s23, %s157_s28  }
   0x9   : > { %p1201_p5 = por %p168_p2, %p167_p0  ;;  %p1205_p6 = por %p174_p4, %p173_p3 }
   0xa   : > { %p925_p7 = scmp.ge.s32.totalorder %s1123_s24, 1  ;;  %p216_p8 = scmp.lt.s32.totalorder %s1123_s24, 3 }
   0xc   : > { %p217_p9 = pnand %p925_p7, %p216_p8 }
   0xd   : > { %s243_s11 = sand.u32 (!%p217_p9), 1, %s1115_s22   ;;  %s927_s12 = sshll.u32 (!%p217_p9), %s1184_s25, 1 }
   0xe   : > { %220 = sbr.rel (%p217_p9) target bundleno = 2430 (0x97e), region = 44  ;;  %p247_p10 = scmp.lt.s32.totalorder (!%p217_p9), %s927_s12, 3 }
   0xf   : > { %s926_s13 = sshll.u32 (!%p217_p9), %s243_s11, 4  ;;  %s1125_s10 = smov (!%p217_p9), 16  }
  0x10   : > { %s1221_s18 = scalar_lea.vmem (!%p217_p9), [#allocation3], %s926_s13  ;;  %s845_s19 = scalar_lea.sflag (!%p217_p9), [#allocation4], %s243_s11 }
  0x11   : > { %s857_s16 = sshll.u32 (!%p217_p9), %s1221_s18, 4  ;;  %s1081_s29 = scalar_lea.hbm (!%p217_p9), %s1391_s6, 32  ;;  %s858_s16 = int_to_ptr.vmem [resolvable:$true] %s857_s16 }
  0x13   : > { %v1002_v0 = vld [vmem:[%s1387_s2] sm:$0xff]  ;;  %s1399_s12 = smov (!%p247_p10, %s927_s12), 3  ;;  %vm266_vm0 = vcmask 130048   ;;  %vm293_vm1 = vcmask 1043456   ;;  %vm289_vm2 = vcmask 64512   ;;  %vm841_vm3 = vcmask 261248  }
  0x14   : > { %277 = vmatpush.bf16.msra.mxu0 %v1002_v0  ;;  %s928_s14 = sshll.u32 %s1399_s12, 3  ;;  %v1232_v7 = vld [vmem:[%s1385_s0] sm:$0xf]  ;;  %s1010_s12 = sshll.u32 %s1184_s25, 4 }
  0x15   : > { %s250_s17 = scalar_lea.vmem %s1386_s1, %s928_s14  ;;  %v1003_v11 = vld [vmem:[%s1389_s4] sm:$0xff]  ;;  %s856_s15 = scalar_lea.hbm %s1391_s6, %s1010_s12 }
  0x16   : > { %v255_v1 = vld [vmem:[%s250_s17] sm:$0xff]  ;;  %v256_v2 = vld [vmem:[%s250_s17 + $0x8] sm:$0xff]  ;;  %352 = vmatpush.bf16.msra.mxu3 %v1003_v11  ;;  %s859_s17 = sshll.u32 %s856_s15, 4  ;;  %s860_s17 = int_to_ptr.hbm [resolvable:$true] %s859_s17 }
  0x17   : > { %v257_v3 = vpack.c.bf16 %v256_v2, %v255_v1  ;;  %831 = vst.msk [vmem:[%s1221_s18] sm:$0xff] %vm266_vm0, %v255_v1  ;;  %v1053_v12 = vld [vmem:[%s1388_s3] ss:$0 sm:$0xff]  ;;  %s1075_s20 = sshra.s32 %s860_s17, 4  ;;  %s1076_s20 = int_to_ptr.hbm [resolvable:$true] %s1075_s20 }
  0x18   : > { %832 = vst.msk [vmem:[%s1221_s18 + $0x8] sm:$0xff] %vm266_vm0, %v256_v2  ;;  %v1004_v30 = vld [vmem:[%s1387_s2] sm:$0xff]  ;;  %s1077_s26 = scalar_lea.hbm %s1076_s20, 16  ;;  %p1082_p0 = scmp.lt.s32.totalorder %s1076_s20, %s1391_s6 }
  0x19   : > { %933 = vmatmul.msk.bf16.vlgmr.msra.gmra.mxu0 %vm266_vm0, %v257_v3  ;;  %v1054_v31 = vld [vmem:[%s1390_s5] ss:$0 sm:$0xff]  ;;  %p1078_p11 = scmp.ne.s32.totalorder %s1076_s20, %s1077_s26  ;;  %p1083_p1 = scmp.lt.s32.totalorder %s1081_s29, %s1077_s26 }
  0x1a   : > { %v1005_v49 = vld [vmem:[%s1389_s4] sm:$0xff] }
  0x1b   : > { %v1055_v50 = vld [vmem:[%s1388_s3] ss:$0 sm:$0xff]  ;;  %p1079_p12 = pnand %p1078_p11, %p1201_p5  ;;  %p1084_p2 = por %p1083_p1, %p1082_p0 }
  0x1d   : > { %p1080_p13 = pneg %p1079_p12 }
  0x1f   : > { %p1085_p3 = pnand %p1084_p2, %p1080_p13 }
  0x96   : > { %v279_v4 = vpop.f32.mrf.mxu0 }
  0x97   : > { %v285_v5 = vpack.c.bf16 %v279_v4, %v279_v4  ;;  %v1006_v4 = vld [vmem:[%s1387_s2 + $0x8] sm:$0xff] }
  0x99   : > { %v295_v6 = vsel %vm293_vm1, %v285_v5, 0  ;;  %v1056_v5 = vld [vmem:[%s1390_s5] ss:$0 sm:$0xff] }
  0x9a   : > { %304 = vmatpush.bf16.msra.mxu1 %v295_v6 }
  0x9d   : > { %934 = vmatmul.msk.bf16.vlgmr.msra.gmra.mxu1 %vm289_vm2, %v1232_v7 }
  0x9e   : > { %v281_v8 = vpop.f32.mrf.mxu0 }
  0x9f   : > { %v312_v9 = vpack.c.bf16 %v281_v8, %v281_v8 }
  0xa1   : > { %v314_v10 = vsel %vm293_vm1, %v312_v9, 0 }
  0xa2   : > { %323 = vmatpush.bf16.msra.mxu2 %v314_v10 }
  0xa5   : > { %935 = vmatmul.msk.bf16.vlgmr.msra.gmra.mxu2 %vm289_vm2, %v1232_v7 }
  0xa6   : > { %422 = vmatpush.bf16.msrb.mxu2 %v1004_v30 }
 0x11a   : > { %v306_v13 = vpop.f32.mrf.mxu1 }
 0x11b   : > { %v307_v14 = vadd.f32 %v1053_v12, %v306_v13 }
 0x11d   : > { %v310_v15 = vmax.f32 %v307_v14, 0.0 }
 0x11f   : > { %311 = vst.msk [vmem:[#allocation2] sm:$0xff] %vm266_vm0, %v310_v15 }
 0x122   : > { %v308_v16 = vpop.f32.mrf.mxu1 }
 0x126   : > { %v331_v21 = vld [vmem:[#allocation2] sm:$0xff] }
 0x128   : > { %v325_v17 = vpop.f32.mrf.mxu2 }
 0x129   : > { %v326_v18 = vadd.f32 %v1053_v12, %v325_v17 }
 0x12b   : > { %v329_v19 = vmax.f32 %v326_v18, 0.0 }
 0x12d   : > { %330 = vst.msk [vmem:[#allocation2 + $0x8] sm:$0xff] %vm266_vm0, %v329_v19 }
 0x130   : > { %v327_v20 = vpop.f32.mrf.mxu2 }
 0x134   : > { %v332_v22 = vld [vmem:[#allocation2 + $0x8] sm:$0xff] }
 0x135   : > { %v333_v23 = vpack.c.bf16 %v332_v22, %v331_v21 }
 0x137   : > { %940 = vmatmul.msk.bf16.vlgmr.msra.gmra.mxu3 %vm266_vm0, %v333_v23 }
 0x1ba   : > { %v354_v24 = vpop.f32.mrf.mxu3 }
 0x1bb   : > { %v360_v25 = vpack.c.bf16 %v354_v24, %v354_v24  ;;  %v1007_v24 = vld [vmem:[%s1389_s4 + $0x8] sm:$0xff] }
 0x1bd   : > { %v365_v26 = vsel %vm293_vm1, %v360_v25, 0  ;;  %v1057_v25 = vld [vmem:[%s1388_s3 + $0x1] ss:$0 sm:$0xff] }
 0x1be   : > { %374 = vmatpush.bf16.msrb.mxu0 %v365_v26 }
 0x1c1   : > { %941 = vmatmul.msk.bf16.vlgmr.msrb.gmra.mxu0 %vm289_vm2, %v1232_v7 }
 0x1c2   : > { %v356_v27 = vpop.f32.mrf.mxu3 }
 0x1c3   : > { %v382_v28 = vpack.c.bf16 %v356_v27, %v356_v27 }
 0x1c5   : > { %v384_v29 = vsel %vm293_vm1, %v382_v28, 0 }
 0x1c6   : > { %393 = vmatpush.bf16.msrb.mxu1 %v384_v29 }
 0x1c9   : > { %942 = vmatmul.msk.bf16.vlgmr.msrb.gmra.mxu1 %vm289_vm2, %v1232_v7 }
 0x1ca   : > { %492 = vmatpush.bf16.msra.mxu1 %v1005_v49 }
 0x23e   : > { %v376_v32 = vpop.f32.mrf.mxu0 }
 0x23f   : > { %v377_v33 = vadd.f32 %v1054_v31, %v376_v32 }
 0x241   : > { %v380_v34 = vmax.f32 %v377_v33, 0.0 }
 0x243   : > { %381 = vst.msk [vmem:[#allocation2] sm:$0xff] %vm266_vm0, %v380_v34 }
 0x246   : > { %v378_v35 = vpop.f32.mrf.mxu0  ;;  %v395_v36 = vpop.f32.mrf.mxu1 }
 0x247   : > { %v396_v37 = vadd.f32 %v1054_v31, %v395_v36 }
 0x249   : > { %v399_v38 = vmax.f32 %v396_v37, 0.0 }
 0x24a   : > { %v401_v40 = vld [vmem:[#allocation2] sm:$0xff] }
 0x24b   : > { %400 = vst.msk [vmem:[#allocation2 + $0x8] sm:$0xff] %vm266_vm0, %v399_v38 }
 0x24e   : > { %v397_v39 = vpop.f32.mrf.mxu1 }
 0x252   : > { %v402_v41 = vld [vmem:[#allocation2 + $0x8] sm:$0xff] }
 0x253   : > { %v403_v42 = vpack.c.bf16 %v402_v41, %v401_v40 }
 0x255   : > { %947 = vmatmul.msk.bf16.vlgmr.msrb.gmra.mxu2 %vm266_vm0, %v403_v42 }
 0x2d8   : > { %v424_v43 = vpop.f32.mrf.mxu2 }
 0x2d9   : > { %v430_v44 = vpack.c.bf16 %v424_v43, %v424_v43  ;;  %v1008_v43 = vld [vmem:[%s1387_s2 + $0x10] sm:$0xff] }
 0x2db   : > { %v435_v45 = vsel %vm293_vm1, %v430_v44, 0  ;;  %v1058_v44 = vld [vmem:[%s1390_s5 + $0x1] ss:$0 sm:$0xff] }
 0x2dc   : > { %444 = vmatpush.bf16.msrb.mxu3 %v435_v45 }
 0x2df   : > { %948 = vmatmul.msk.bf16.vlgmr.msrb.gmra.mxu3 %vm289_vm2, %v1232_v7 }
 0x2e0   : > { %v426_v46 = vpop.f32.mrf.mxu2 }
 0x2e1   : > { %v452_v47 = vpack.c.bf16 %v426_v46, %v426_v46 }
 0x2e3   : > { %v454_v48 = vsel %vm293_vm1, %v452_v47, 0 }
 0x2e4   : > { %463 = vmatpush.bf16.msra.mxu0 %v454_v48 }
 0x2e7   : > { %949 = vmatmul.msk.bf16.vlgmr.msra.gmra.mxu0 %vm289_vm2, %v1232_v7 }
 0x2e8   : > { %563 = vmatpush.bf16.msrb.mxu0 %v1006_v4 }
 0x362   : > { %v446_v51 = vpop.f32.mrf.mxu3 }
 0x363   : > { %v447_v52 = vadd.f32 %v1055_v50, %v446_v51 }
 0x364   : > { %v465_v53 = vpop.f32.mrf.mxu0 }
 0x365   : > { %v450_v54 = vmax.f32 %v447_v52, 0.0  ;;  %v466_v55 = vadd.f32 %v1055_v50, %v465_v53 }
 0x367   : > { %451 = vst.msk [vmem:[#allocation2] sm:$0xff] %vm266_vm0, %v450_v54  ;;  %v469_v56 = vmax.f32 %v466_v55, 0.0 }
 0x369   : > { %470 = vst.msk [vmem:[#allocation2 + $0x8] sm:$0xff] %vm266_vm0, %v469_v56 }
 0x36a   : > { %v448_v57 = vpop.f32.mrf.mxu3 }
 0x36c   : > { %v467_v58 = vpop.f32.mrf.mxu0 }
 0x36e   : > { %v471_v59 = vld [vmem:[#allocation2] sm:$0xff] }
 0x370   : > { %v472_v60 = vld [vmem:[#allocation2 + $0x8] sm:$0xff] }
 0x371   : > { %v473_v61 = vpack.c.bf16 %v472_v60, %v471_v59 }
 0x373   : > { %954 = vmatmul.msk.bf16.vlgmr.msra.gmra.mxu1 %vm266_vm0, %v473_v61 }
 0x3f0   : > { %v494_v62 = vpop.f32.mrf.mxu1 }
 0x3f1   : > { %v500_v63 = vpack.c.bf16 %v494_v62, %v494_v62  ;;  %v1009_v62 = vld [vmem:[%s1389_s4 + $0x10] sm:$0xff] }
 0x3f3   : > { %v505_v0 = vsel %vm293_vm1, %v500_v63, 0  ;;  %v1059_v63 = vld [vmem:[%s1388_s3 + $0x2] ss:$0 sm:$0xff] }
 0x3f4   : > { %514 = vmatpush.bf16.msra.mxu2 %v505_v0 }
 0x3f7   : > { %955 = vmatmul.msk.bf16.vlgmr.msra.gmra.mxu2 %vm289_vm2, %v1232_v7 }
 0x3f8   : > { %v496_v1 = vpop.f32.mrf.mxu1 }
 0x3f9   : > { %v522_v2 = vpack.c.bf16 %v496_v1, %v496_v1 }
 0x3fb   : > { %v524_v3 = vsel %vm293_vm1, %v522_v2, 0 }
 0x3fc   : > { %533 = vmatpush.bf16.msra.mxu3 %v524_v3 }
 0x3ff   : > { %956 = vmatmul.msk.bf16.vlgmr.msra.gmra.mxu3 %vm289_vm2, %v1232_v7 }
 0x400   : > { %635 = vmatpush.bf16.msrb.mxu3 %v1007_v24 }
 0x47a   : > { %v516_v6 = vpop.f32.mrf.mxu2 }
 0x47b   : > { %v517_v8 = vadd.f32 %v1056_v5, %v516_v6 }
 0x47d   : > { %v520_v9 = vmax.f32 %v517_v8, 0.0 }
 0x47f   : > { %521 = vst.msk [vmem:[#allocation2] sm:$0xff] %vm266_vm0, %v520_v9 }
 0x482   : > { %v518_v10 = vpop.f32.mrf.mxu2  ;;  %v535_v11 = vpop.f32.mrf.mxu3 }
 0x483   : > { %v536_v12 = vadd.f32 %v1056_v5, %v535_v11 }
 0x485   : > { %v539_v13 = vmax.f32 %v536_v12, 0.0 }
 0x486   : > { %v541_v15 = vld [vmem:[#allocation2] sm:$0xff] }
 0x487   : > { %540 = vst.msk [vmem:[#allocation2 + $0x8] sm:$0xff] %vm266_vm0, %v539_v13 }
 0x48a   : > { %v537_v14 = vpop.f32.mrf.mxu3 }
 0x48e   : > { %v542_v16 = vld [vmem:[#allocation2 + $0x8] sm:$0xff] }
 0x48f   : > { %v543_v17 = vpack.c.bf16 %v542_v16, %v541_v15 }
 0x491   : > { %963 = vmatmul.msk.bf16.vlgmr.msrb.gmra.mxu0 %vm266_vm0, %v543_v17 }
 0x50e   : > { %v565_v18 = vpop.f32.mrf.mxu0 }
 0x50f   : > { %v572_v19 = vpack.c.bf16 %v565_v18, %v565_v18  ;;  %v1060_v18 = vld [vmem:[%s1390_s5 + $0x2] ss:$0 sm:$0xff] }
 0x511   : > { %v577_v20 = vsel %vm293_vm1, %v572_v19, 0 }
 0x512   : > { %586 = vmatpush.bf16.msrb.mxu1 %v577_v20 }
 0x515   : > { %965 = vmatmul.msk.bf16.vlgmr.msrb.gmra.mxu1 %vm289_vm2, %v1232_v7 }
 0x516   : > { %v567_v21 = vpop.f32.mrf.mxu0 }
 0x517   : > { %v594_v22 = vpack.c.bf16 %v567_v21, %v567_v21 }
 0x519   : > { %v596_v23 = vsel %vm293_vm1, %v594_v22, 0 }
 0x51a   : > { %605 = vmatpush.bf16.msrb.mxu2 %v596_v23 }
 0x51d   : > { %966 = vmatmul.msk.bf16.vlgmr.msrb.gmra.mxu2 %vm289_vm2, %v1232_v7 }
 0x51e   : > { %707 = vmatpush.bf16.msra.mxu2 %v1008_v43 }
 0x592   : > { %v588_v26 = vpop.f32.mrf.mxu1 }
 0x593   : > { %v589_v27 = vadd.f32 %v1057_v25, %v588_v26 }
 0x595   : > { %v592_v28 = vmax.f32 %v589_v27, 0.0 }
 0x597   : > { %593 = vst.msk [vmem:[#allocation2] sm:$0xff] %vm266_vm0, %v592_v28 }
 0x59a   : > { %v590_v29 = vpop.f32.mrf.mxu1 }
 0x59e   : > { %v613_v34 = vld [vmem:[#allocation2] sm:$0xff] }
 0x5a0   : > { %v607_v30 = vpop.f32.mrf.mxu2 }
 0x5a1   : > { %v608_v31 = vadd.f32 %v1057_v25, %v607_v30 }
 0x5a3   : > { %v611_v32 = vmax.f32 %v608_v31, 0.0 }
 0x5a5   : > { %612 = vst.msk [vmem:[#allocation2 + $0x8] sm:$0xff] %vm266_vm0, %v611_v32 }
 0x5a8   : > { %v609_v33 = vpop.f32.mrf.mxu2 }
 0x5ac   : > { %v614_v35 = vld [vmem:[#allocation2 + $0x8] sm:$0xff] }
 0x5ad   : > { %v615_v36 = vpack.c.bf16 %v614_v35, %v613_v34 }
 0x5af   : > { %973 = vmatmul.msk.bf16.vlgmr.msrb.gmra.mxu3 %vm266_vm0, %v615_v36 }
 0x632   : > { %v637_v37 = vpop.f32.mrf.mxu3 }
 0x633   : > { %v644_v38 = vpack.c.bf16 %v637_v37, %v637_v37 }
 0x635   : > { %v649_v39 = vsel %vm293_vm1, %v644_v38, 0 }
 0x636   : > { %658 = vmatpush.bf16.msra.mxu0 %v649_v39 }
 0x639   : > { %975 = vmatmul.msk.bf16.vlgmr.msra.gmra.mxu0 %vm289_vm2, %v1232_v7 }
 0x63a   : > { %v639_v40 = vpop.f32.mrf.mxu3 }
 0x63b   : > { %v666_v41 = vpack.c.bf16 %v639_v40, %v639_v40 }
 0x63d   : > { %v668_v42 = vsel %vm293_vm1, %v666_v41, 0 }
 0x63e   : > { %677 = vmatpush.bf16.msra.mxu1 %v668_v42 }
 0x641   : > { %976 = vmatmul.msk.bf16.vlgmr.msra.gmra.mxu1 %vm289_vm2, %v1232_v7 }
 0x642   : > { %779 = vmatpush.bf16.msrb.mxu1 %v1009_v62 }
 0x6b6   : > { %v660_v45 = vpop.f32.mrf.mxu0 }
 0x6b7   : > { %v661_v46 = vadd.f32 %v1058_v44, %v660_v45 }
 0x6b9   : > { %v664_v47 = vmax.f32 %v661_v46, 0.0 }
 0x6bb   : > { %665 = vst.msk [vmem:[#allocation2] sm:$0xff] %vm266_vm0, %v664_v47 }
 0x6be   : > { %v662_v48 = vpop.f32.mrf.mxu0  ;;  %v679_v49 = vpop.f32.mrf.mxu1 }
 0x6bf   : > { %v680_v50 = vadd.f32 %v1058_v44, %v679_v49 }
 0x6c1   : > { %v683_v51 = vmax.f32 %v680_v50, 0.0 }
 0x6c2   : > { %v685_v53 = vld [vmem:[#allocation2] sm:$0xff] }
 0x6c3   : > { %684 = vst.msk [vmem:[#allocation2 + $0x8] sm:$0xff] %vm266_vm0, %v683_v51 }
 0x6c6   : > { %v681_v52 = vpop.f32.mrf.mxu1 }
 0x6ca   : > { %v686_v54 = vld [vmem:[#allocation2 + $0x8] sm:$0xff] }
 0x6cb   : > { %v687_v55 = vpack.c.bf16 %v686_v54, %v685_v53 }
 0x6cd   : > { %983 = vmatmul.msk.bf16.vlgmr.msra.gmra.mxu2 %vm266_vm0, %v687_v55 }
 0x750   : > { %v709_v56 = vpop.f32.mrf.mxu2 }
 0x751   : > { %v716_v57 = vpack.c.bf16 %v709_v56, %v709_v56 }
 0x753   : > { %v721_v58 = vsel %vm293_vm1, %v716_v57, 0 }
 0x754   : > { %730 = vmatpush.bf16.msra.mxu3 %v721_v58 }
 0x757   : > { %985 = vmatmul.msk.bf16.vlgmr.msra.gmra.mxu3 %vm289_vm2, %v1232_v7 }
 0x758   : > { %v711_v59 = vpop.f32.mrf.mxu2 }
 0x759   : > { %v738_v60 = vpack.c.bf16 %v711_v59, %v711_v59 }
 0x75b   : > { %v740_v61 = vsel %vm293_vm1, %v738_v60, 0 }
 0x75c   : > { %749 = vmatpush.bf16.msrb.mxu0 %v740_v61 }
 0x75f   : > { %986 = vmatmul.msk.bf16.vlgmr.msrb.gmra.mxu0 %vm289_vm2, %v1232_v7 }
 0x7da   : > { %v732_v0 = vpop.f32.mrf.mxu3 }
 0x7db   : > { %v733_v1 = vadd.f32 %v1059_v63, %v732_v0 }
 0x7dc   : > { %v751_v2 = vpop.f32.mrf.mxu0 }
 0x7dd   : > { %v736_v3 = vmax.f32 %v733_v1, 0.0  ;;  %v752_v4 = vadd.f32 %v1059_v63, %v751_v2 }
 0x7df   : > { %737 = vst.msk [vmem:[#allocation2] sm:$0xff] %vm266_vm0, %v736_v3  ;;  %v755_v5 = vmax.f32 %v752_v4, 0.0 }
 0x7e1   : > { %756 = vst.msk [vmem:[#allocation2 + $0x8] sm:$0xff] %vm266_vm0, %v755_v5 }
 0x7e2   : > { %v734_v6 = vpop.f32.mrf.mxu3 }
 0x7e4   : > { %v753_v8 = vpop.f32.mrf.mxu0 }
 0x7e6   : > { %v757_v9 = vld [vmem:[#allocation2] sm:$0xff] }
 0x7e8   : > { %v758_v10 = vld [vmem:[#allocation2 + $0x8] sm:$0xff] }
 0x7e9   : > { %v759_v11 = vpack.c.bf16 %v758_v10, %v757_v9 }
 0x7eb   : > { %993 = vmatmul.msk.bf16.vlgmr.msrb.gmra.mxu1 %vm266_vm0, %v759_v11 }
 0x868   : > { %v781_v12 = vpop.f32.mrf.mxu1 }
 0x869   : > { %v788_v13 = vpack.c.bf16 %v781_v12, %v781_v12 }
 0x86b   : > { %v793_v14 = vsel %vm293_vm1, %v788_v13, 0 }
 0x86c   : > { %802 = vmatpush.bf16.msrb.mxu2 %v793_v14 }
 0x86f   : > { %995 = vmatmul.msk.bf16.vlgmr.msrb.gmra.mxu2 %vm289_vm2, %v1232_v7 }
 0x870   : > { %v783_v15 = vpop.f32.mrf.mxu1 }
 0x871   : > { %v810_v16 = vpack.c.bf16 %v783_v15, %v783_v15 }
 0x873   : > { %v812_v17 = vsel %vm293_vm1, %v810_v16, 0 }
 0x874   : > { %821 = vmatpush.bf16.msrb.mxu3 %v812_v17 }
 0x877   : > { %996 = vmatmul.msk.bf16.vlgmr.msrb.gmra.mxu3 %vm289_vm2, %v1232_v7 }
 0x8f2   : > { %v804_v19 = vpop.f32.mrf.mxu2 }
 0x8f3   : > { %v805_v20 = vadd.f32 %v1060_v18, %v804_v19 }
 0x8f5   : > { %v808_v21 = vmax.f32 %v805_v20, 0.0 }
 0x8f7   : > { %809 = vst.msk [vmem:[#allocation2] sm:$0xff] %vm266_vm0, %v808_v21 }
 0x8fa   : > { %v806_v22 = vpop.f32.mrf.mxu2  ;;  %v823_v23 = vpop.f32.mrf.mxu3 }
 0x8fb   : > { %v824_v24 = vadd.f32 %v1060_v18, %v823_v23 }
 0x8fd   : > { %v827_v25 = vmax.f32 %v824_v24, 0.0 }
 0x8fe   : > { %v829_v26 = vld [vmem:[#allocation2] sm:$0xff] }
 0x8ff   : > { %828 = vst.msk [vmem:[#allocation2 + $0x8] sm:$0xff] %vm266_vm0, %v827_v25  ;;  %835 = vrot.lane.b32.xlu0 %v829_v26, %s1125_s10 }
 0x902   : > { %v825_v7 = vpop.f32.mrf.mxu3 }
 0x906   : > { %v830_v27 = vld [vmem:[#allocation2 + $0x8] sm:$0xff] }
 0x907   : > { %837 = vrot.lane.b32.xlu0 %v830_v27, %s1125_s10 }
 0x971   : > { %v836_v28 = vpop.permute.xlu0 %835 }
 0x972   : > { %842 = vst.msk [vmem:[%s1221_s18] sm:$0xff] %vm841_vm3, %v836_v28 }
 0x979   : > { %v838_v29 = vpop.permute.xlu0 %837 }
 0x97a   : > { %843 = vst.msk [vmem:[%s1221_s18 + $0x8] sm:$0xff] %vm841_vm3, %v838_v29 }
 0x97b   : > { %1088 = shalt.err (!%p1085_p3)
}
 0x97c   : > { %s1126_s11 = smov 128   ;;  %s1127_s18 = smov 8  }
 0x97d   : > { %1011 = dma.vmem_to_hbm [thread:$0]  (%p1201_p5), %s858_s16, 256, %s860_s17, %s845_s19, %s1126_s11, %s1126_s11, %s1127_s18  }
 0x97e PF: > { %p1017_p4 = scmp.ge.s32.totalorder %s1123_s24, 2  ;;  %s874_s12 = sand.u32 1, %s1111_s21  }
 0x97f   : > { %s875_s13 = scalar_lea.sflag [#allocation4], %s874_s12 }
 0x980   : > { %p1014_p7 = pnand %p1017_p4, %p1205_p6 }
 0x982   : > { %p1015_p8 = pneg %p1014_p7 }
 0x984   : > { %1106 = dma.done.wait (%p1015_p8), %s875_s13, 256  }
 0x985   : > { %1108 = vsyncadd (%p1015_p8), %s875_s13, 4294967040  ;;  %p16_p9 = scmp.ge.s32.totalorder %s1188_s27, 4   ;;  %s1394_s21 = smov %s1115_s22 }
 0x986   : > { %s1395_s22 = smov %s1119_s23  ;;  %s1396_s23 = smov %s1199_s30 }
 0x987   : > { %s1397_s24 = smov %s1188_s27  ;;  %18 = sbr.rel (!%p16_p9) target bundleno = 3 (0x3), region = 87 }
 0x98c   :  { %881 = vsyncpa [#allocation4], 1 }
 0x98d   :  { %883 = vsyncpa [#allocation4 + $0x1], 1 }

</bundles_post_ra>
